<compile_context>
chip_gen: v7x
topology: tpu7x:2x2x1
jax: 0.10.0
libtpu: 0.0.40
codegen_flags: <defaults>
</compile_context>

<pallas_src>
import functools
import math

import jax
import jax.numpy as jnp
from jax.experimental import pallas as pl
from jax.experimental.pallas import tpu as pltpu


# --------------------------- hardware-aware budgets ------------------------- #

@functools.lru_cache(maxsize=1)
def _hw_budget():
    """(per-tile byte target, vmem_limit_bytes) chosen per TPU generation."""
    vmem_bytes = 64 * 1024 * 1024                    # conservative (v7x-like) default
    try:
        info = pltpu.get_tpu_info()
        v = getattr(info, "vmem_capacity_bytes", None)
        if v:
            vmem_bytes = int(v)
    except Exception:
        pass
    if vmem_bytes >= 96 * 1024 * 1024:               # v5e / v6e: 128 MiB physical VMEM
        return 4 * 1024 * 1024, 64 * 1024 * 1024
    # v7x: 64 MiB per TensorCore -> smaller tiles so double-buffering survives.
    return 2 * 1024 * 1024, 32 * 1024 * 1024


def _choose_tiles(r, s, itemsize, target_bytes):
    """Pick (tile_r, tile_m, chunk): lane-dense tiles under the byte budget."""
    # Row (sublane) tile: full rows when tiny, else a multiple of 8.
    if r <= 8:
        tile_r = r
    else:
        tile_r = min((r // 8) * 8, 256)
    full_lanes = (s // 128) * 128                    # kernel path guarantees s >= 128
    budget_lanes = max(128, (target_bytes // (tile_r * itemsize)) // 128 * 128)
    # Chunk = width of one unmasked VPU add into the accumulator.
    chunk = 128
    for c in (1024, 512, 256):
        if full_lanes >= c and budget_lanes >= c:
            chunk = c
            break
    # Lane tile: multiple of `chunk`, <= budget, and <= 32 chunks so the
    # (static) chunk loop stays short.
    tile_m = min(full_lanes, budget_lanes, 32 * chunk)
    tile_m = max(chunk, (tile_m // chunk) * chunk)
    return tile_r, tile_m, chunk


def _too_small(s):
    # Degenerate lane extent (2-D inputs / tiny spatial) -> plain jnp.
    # TODO(synk): in production raise this to ~1 MiB of activation bytes to skip
    # two kernel launches on tiny tensors; kept at the lane-width floor here so
    # the demo shape exercises the Pallas path.
    return s < 128


# ---------------------------------- kernels --------------------------------- #

def _row_sum_kernel(tile_m, chunk, s_total, x_ref, psum_ref, acc_ref):
    """Pass 1: per-row (= per batch*channel) sums over the spatial axis.

    grid = (row_tiles, n_par, spatial_tiles); the spatial axis is the reduction
    ('arbitrary', innermost).  acc_ref is a lane-dense (tile_r, chunk) f32
    accumulator: interior tiles are pure, unmasked VPU adds; the cross-lane
    reduce + narrow store happen once in the epilogue.
    """
    p = pl.program_id(1)
    m = pl.program_id(2)
    n_m = pl.num_programs(2)
    n_chunks = tile_m // chunk                       # static

    @pl.when(m == 0)
    def _():
        acc_ref[...] = jnp.zeros_like(acc_ref)

    def accumulate(mask_tail):
        total = acc_ref[...]                         # (tile_r, chunk) f32
        if mask_tail:
            lane = jax.lax.broadcasted_iota(jnp.int32, acc_ref.shape, 1)
            base = (p * n_m + m) * tile_m
        for c in range(n_chunks):                    # short, static unroll
            xc = x_ref[:, c * chunk:(c + 1) * chunk].astype(jnp.float32)
            if mask_tail:
                xc = jnp.where(base + c * chunk + lane < s_total, xc, 0.0)
            total = total + xc
        acc_ref[...] = total

    if s_total % tile_m != 0:                        # static: only the very last
        is_tail = jnp.logical_and(p == pl.num_programs(1) - 1, m == n_m - 1)

        @pl.when(is_tail)
        def _():
            accumulate(True)

        @pl.when(jnp.logical_not(is_tail))
        def _():
            accumulate(False)
    else:
        accumulate(False)

    @pl.when(m == n_m - 1)
    def _():
        # Single cross-lane reduce + narrow store per (row-tile, split).
        psum_ref[...] = jnp.sum(acc_ref[...], axis=-1, keepdims=True)[None]


def _subtract_kernel(cdt, x_ref, mean_ref, out_ref):
    """Pass 2: subtract the per-row mean (native-dtype compute for bf16)."""
    mean = mean_ref[...].astype(cdt)                 # (tile_r, 1)
    out_ref[...] = (x_ref[...].astype(cdt) - mean).astype(out_ref.dtype)


# --------------------------------- wrappers ---------------------------------- #

def _row_sums(x2):
    """x2: (R, S) -> per-row sums (R,) in f32."""
    r, s = x2.shape
    target_bytes, vmem_limit = _hw_budget()
    tile_r, tile_m, chunk = _choose_tiles(r, s, x2.dtype.itemsize, target_bytes)
    n_r = pl.cdiv(r, tile_r)
    n_m_total = pl.cdiv(s, tile_m)
    # Give a second TensorCore (v7x) work when the row grid alone cannot.
    n_par = 2 if (n_r == 1 and n_m_total % 2 == 0 and n_m_total >= 4) else 1
    n_m = n_m_total // n_par

    out = pl.pallas_call(
        functools.partial(_row_sum_kernel, tile_m, chunk, s),
        out_shape=jax.ShapeDtypeStruct((n_par, r, 1), jnp.float32),
        grid=(n_r, n_par, n_m),
        in_specs=[pl.BlockSpec((tile_r, tile_m),
                               lambda i, p, m, nm=n_m: (i, p * nm + m))],
        out_specs=pl.BlockSpec((1, tile_r, 1), lambda i, p, m: (p, i, 0)),
        scratch_shapes=[pltpu.VMEM((tile_r, chunk), jnp.float32)],
        compiler_params=pltpu.CompilerParams(
            dimension_semantics=("parallel", "parallel", "arbitrary"),
            vmem_limit_bytes=vmem_limit),
    )(x2)
    return out[:, :, 0].sum(axis=0)                  # (R,) f32


def _subtract_mean(x2, mean_rows, donate=False):
    """x2: (R, S), mean_rows: (R,) f32 -> x2 - mean_rows[:, None] in x2.dtype."""
    r, s = x2.shape
    target_bytes, vmem_limit = _hw_budget()
    tile_r, tile_m, _ = _choose_tiles(r, s, x2.dtype.itemsize, target_bytes)
    n_r = pl.cdiv(r, tile_r)
    n_m = pl.cdiv(s, tile_m)
    mean2 = mean_rows.reshape(r, 1).astype(jnp.float32)
    cdt = x2.dtype if x2.dtype == jnp.bfloat16 else jnp.float32

    return pl.pallas_call(
        functools.partial(_subtract_kernel, cdt),
        out_shape=jax.ShapeDtypeStruct((r, s), x2.dtype),
        grid=(n_r, n_m),
        in_specs=[pl.BlockSpec((tile_r, tile_m), lambda i, j: (i, j)),
                  pl.BlockSpec((tile_r, 1), lambda i, j: (i, 0))],
        out_specs=pl.BlockSpec((tile_r, tile_m), lambda i, j: (i, j)),
        input_output_aliases=({0: 0} if donate else {}),
        compiler_params=pltpu.CompilerParams(
            dimension_semantics=("parallel", "parallel"),
            vmem_limit_bytes=vmem_limit),
    )(x2, mean2)


def mean_norm_train(x, running_mean, momentum=0.1, donate_input=False):
    """Training-mode forward: returns (centered x, new running_mean)."""
    n, c = x.shape[0], x.shape[1]
    s = math.prod(x.shape[2:]) if x.ndim > 2 else 1
    r = n * c
    x2 = x.reshape(r, s)                              # free view, no transpose

    if _too_small(s):
        xf = x2.astype(jnp.float32)
        mean_c = xf.reshape(n, c, s).mean(axis=-1).mean(axis=0)      # (C,)
        out = (xf - jnp.tile(mean_c, n)[:, None]).astype(x.dtype).reshape(x.shape)
    else:
        row_sums = _row_sums(x2)                      # (R,) f32
        # Two-stage mean (over spatial, then over batch) matches PyTorch exactly.
        mean_c = (row_sums.reshape(n, c) * (1.0 / s)).mean(axis=0)   # (C,) f32
        mean_rows = jnp.tile(mean_c, n)               # (R,) f32, row = n*C + c
        out = _subtract_mean(x2, mean_rows, donate=donate_input).reshape(x.shape)

    new_rm = ((1.0 - momentum) * running_mean.astype(jnp.float32)
              + momentum * mean_c)
    return out, new_rm.astype(running_mean.dtype)


def mean_norm_eval(x, running_mean, donate_input=False):
    """Eval-mode forward: subtract the stored running_mean per channel."""
    n, c = x.shape[0], x.shape[1]
    s = math.prod(x.shape[2:]) if x.ndim > 2 else 1
    r = n * c
    x2 = x.reshape(r, s)
    rm32 = running_mean.astype(jnp.float32)

    if _too_small(s):
        out = (x2.astype(jnp.float32) - jnp.tile(rm32, n)[:, None]).astype(x.dtype)
        return out.reshape(x.shape)
    return _subtract_mean(x2, jnp.tile(rm32, n), donate=donate_input).reshape(x.shape)


# ----------------------------------- main ------------------------------------ #

if __name__ == "__main__":
    key = jax.random.PRNGKey(0)
    N, C, H, W = 2, 4, 16, 16
    momentum = 0.1

    x = jax.random.normal(key, (N, C, H, W), dtype=jnp.float32)
    running_mean = jnp.zeros((C,), jnp.float32)       # buffer init: torch.zeros(C)

    # --- training-mode forward (kernels) ---
    y, new_rm = mean_norm_train(x, running_mean, momentum=momentum)
    y, new_rm = jax.block_until_ready((y, new_rm))

    # --- pure-JAX reference (mirrors the PyTorch module) ---
    y_flat = x.reshape(N, C, -1)
    mean_ref = y_flat.mean(axis=-1).mean(axis=0)                    # (C,)
    out_ref = (y_flat - mean_ref[None, :, None]).reshape(x.shape)
    rm_ref = (1.0 - momentum) * running_mean + momentum * mean_ref

    assert jnp.allclose(y, out_ref, atol=1e-5, rtol=1e-5)
    assert jnp.allclose(new_rm, rm_ref, atol=1e-6, rtol=1e-6)

    # --- eval-mode forward (kernel) using the updated running mean ---
    y_eval = jax.block_until_ready(mean_norm_eval(x, new_rm))
    y_eval_ref = (y_flat - new_rm[None, :, None]).reshape(x.shape)
    assert jnp.allclose(y_eval, y_eval_ref, atol=1e-5, rtol=1e-5)

    print("KERNEL_OK")
</pallas_src>

<mosaic_0001>
module attributes {stable_mosaic.version = 11 : i64} {
  func.func @_row_sum_kernel(%arg0: i32, %arg1: i32, %arg2: i32, %arg3: memref<8x256xf32, #tpu.memory_space<vmem>>, %arg4: memref<1x8x1xf32, #tpu.memory_space<vmem>>, %arg5: memref<8x256xf32, #tpu.memory_space<vmem>>) attributes {dimension_semantics = [#tpu.dimension_semantics<parallel>, #tpu.dimension_semantics<parallel>, #tpu.dimension_semantics<arbitrary>], iteration_bounds = array<i64: 1, 1, 1>, scalar_prefetch = 0 : i64, scratch_operands = 1 : i64, tpu.core_type = #tpu.core_type<tc>, window_params = [{transform_indices = @transform_0, window_bounds = array<i64: 8, 256>}, {transform_indices = @transform_1, window_bounds = array<i64: 1, 8, 1>}]} {
    %c0_i32 = arith.constant 0 : i32
    %0 = arith.cmpi eq, %arg2, %c0_i32 : i32
    %1 = arith.extui %0 : i1 to i32
    %c0_i32_0 = arith.constant 0 : i32
    %2 = arith.cmpi ne, %1, %c0_i32_0 : i32
    scf.if %2 {
      %cst = arith.constant 0.000000e+00 : f32
      %10 = vector.broadcast %cst : f32 to vector<8x256xf32>
      %c0_8 = arith.constant 0 : index
      %c0_9 = arith.constant 0 : index
      %11 = vector.load %arg5[%c0_8, %c0_9] : memref<8x256xf32, #tpu.memory_space<vmem>>, vector<8x256xf32>
      tpu.vector_store %arg5[%c0_8, %c0_9], %10 {strides = array<i32>} : memref<8x256xf32, #tpu.memory_space<vmem>>, vector<8x256xf32>,
    } else {
    }
    %c0 = arith.constant 0 : index
    %c0_1 = arith.constant 0 : index
    %3 = vector.load %arg5[%c0, %c0_1] : memref<8x256xf32, #tpu.memory_space<vmem>>, vector<8x256xf32>
    %c0_2 = arith.constant 0 : index
    %c0_3 = arith.constant 0 : index
    %4 = vector.load %arg3[%c0_2, %c0_3] : memref<8x256xf32, #tpu.memory_space<vmem>>, vector<8x256xf32>
    %5 = arith.addf %3, %4 : vector<8x256xf32>
    %c0_4 = arith.constant 0 : index
    %c0_5 = arith.constant 0 : index
    %6 = vector.load %arg5[%c0_4, %c0_5] : memref<8x256xf32, #tpu.memory_space<vmem>>, vector<8x256xf32>
    tpu.vector_store %arg5[%c0_4, %c0_5], %5 {strides = array<i32>} : memref<8x256xf32, #tpu.memory_space<vmem>>, vector<8x256xf32>,
    %c0_i32_6 = arith.constant 0 : i32
    %7 = arith.cmpi eq, %arg2, %c0_i32_6 : i32
    %8 = arith.extui %7 : i1 to i32
    %c0_i32_7 = arith.constant 0 : i32
    %9 = arith.cmpi ne, %8, %c0_i32_7 : i32
    scf.if %9 {
      %c0_8 = arith.constant 0 : index
      %c0_9 = arith.constant 0 : index
      %10 = vector.load %arg5[%c0_8, %c0_9] : memref<8x256xf32, #tpu.memory_space<vmem>>, vector<8x256xf32>
      %cst = arith.constant dense<0.000000e+00> : vector<8xf32>
      %11 = vector.multi_reduction <add>, %10, %cst [1] : vector<8x256xf32> to vector<8xf32>
      %12 = vector.shape_cast %11 : vector<8xf32> to vector<8x1xf32>
      %13 = vector.shape_cast %12 : vector<8x1xf32> to vector<1x8x1xf32>
      %c0_10 = arith.constant 0 : index
      %c0_11 = arith.constant 0 : index
      %c0_12 = arith.constant 0 : index
      %14 = vector.load %arg4[%c0_10, %c0_11, %c0_12] : memref<1x8x1xf32, #tpu.memory_space<vmem>>, vector<1x8x1xf32>
      tpu.vector_store %arg4[%c0_10, %c0_11, %c0_12], %13 {strides = array<i32>} : memref<1x8x1xf32, #tpu.memory_space<vmem>>, vector<1x8x1xf32>,
    } else {
    }
    return
  }
  func.func @transform_0(%arg0: i32, %arg1: i32, %arg2: i32) -> (i32, i32) {
    %c1_i32 = arith.constant 1 : i32
    %0 = arith.muli %arg1, %c1_i32 : i32
    %1 = arith.addi %0, %arg2 : i32
    %c0_i32 = arith.constant 0 : i32
    return %arg0, %1 : i32, i32
  }
  func.func @transform_1(%arg0: i32, %arg1: i32, %arg2: i32) -> (i32, i32, i32) {
    %c0_i32 = arith.constant 0 : i32
    %c0_i32_0 = arith.constant 0 : i32
    return %arg1, %arg0, %c0_i32 : i32, i32, i32
  }
}

</mosaic_0001>

<bundles_post_ra>
// kernel: tpu_custom_call.1
= control target key start
LH: loop header
LB: loop body
LE: loop exit
PB: predicated region body
PF: predicated region fallthrough
CT: control target
= control target key end

     0   :  { %6 = vsyncpa [#allocation4], 0  ;;  %s80_s6 = smov [#allocation3]   ;;  %s106_s0 = inlined_call_operand.hbm [shape: f32[8,256], index: 0, kind: input, shape index: {}]   ;;  %s107_s1 = inlined_call_operand.vmem [shape: f32[1,8,1], index: 1, kind: output, shape index: {}]  }
   0x1   :  { %s17_s7 = sshll.u32 %s80_s6, 4  ;;  %s56_s10 = scalar_lea.hbm %s106_s0, 256  ;;  %s18_s7 = int_to_ptr.vmem [resolvable:$true] %s17_s7 }
   0x2   :  { %p57_p0 = scmp.ne.s32.totalorder %s106_s0, %s56_s10  ;;  %p60_p1 = scmp.lt.u32.totalorder %s56_s10, %s106_s0 }
   0x4   :  { %p62_p2 = pnand %p60_p1, %p57_p0 }
   0x6   :  { %65 = shalt.err (!%p62_p2)
}
   0x7   :  { %s66_s15 = scalar_lea.vmem %s18_s7, 256  ;;  %p71_p4 = scmp.lt.s32.totalorder %s18_s7, %s18_s7 }
   0x8   :  { %p67_p3 = scmp.ne.s32.totalorder %s18_s7, %s66_s15  ;;  %p72_p5 = scmp.lt.s32.totalorder %s66_s15, %s66_s15 }
   0xa   :  { %p73_p6 = por %p72_p5, %p71_p4 }
   0xc   :  { %p74_p7 = pnand %p73_p6, %p67_p3 }
   0xe   :  { %77 = shalt.err (!%p74_p7)
}
   0xf   :  { %20 = dma.hbm_to_vmem [thread:$0]  %s106_s0, 256, %s18_s7, [#allocation4]  }
  0x10   :  { %78 = dma.done.wait [#allocation4], 256  }
  0x11   :  { %79 = vsyncadd [#allocation4], 4294967040  ;;  %v34_v0 = vld [vmem:[#allocation3] sm:$0xff]  ;;  %v35_v1 = vld [vmem:[#allocation3 + $0x8] sm:$0xff]  ;;  %vm48_vm0 = vcmask 7168  }
  0x12   :  { %v45_v2 = vadd.f32 %v35_v1, %v34_v0 }
  0x14   :  { %46 = vadd.xlane.f32.xlu0 %v45_v2 }
  0xa1   :  { %v47_v3 = vpop.xlane.xlu0 %46 }
  0xa2   :  { %49 = vst.msk [vmem:[%s107_s1] sm:$0xff] %vm48_vm0, %v47_v3 }
  0xa3   :  { %54 = vsyncpa [#allocation4], 1 }

</bundles_post_ra>
